<compile_context>
chip_gen: v7x
topology: tpu7x:2x2x1
jax: 0.10.0
libtpu: 0.0.40
codegen_flags: <defaults>
</compile_context>

<pallas_src>
import functools
import math

import jax
import jax.numpy as jnp
from jax.experimental import pallas as pl
from jax.experimental.pallas import tpu as pltpu

EPS = 1e-07
_LOG_EPS = math.log(EPS)
_LOG_1M_EPS = math.log(1.0 - EPS)
_NEG = -1e9                       # logit value for masked (padded) class lanes
_X_TILE_BYTES = 2 * 1024 * 1024   # target activation bytes per grid step
_VMEM_FLOOR = 32 * 1024 * 1024
_VMEM_CEIL = 56 * 1024 * 1024     # headroom under v7x's 64 MiB/TC VMEM


def _round_up(x, m):
    return (x + m - 1) // m * m


def _cdiv(a, b):
    return -(-a // b)


def _choose_tile_n(n, c_phys, itemsize, row_align):
    """Rows per grid step: ~2 MiB activation tiles; >=2 steps for v7x megacore."""
    tn = _X_TILE_BYTES // (c_phys * itemsize)
    tn = max(256, min(4096, tn))
    num_tiles = _cdiv(n, tn)
    if num_tiles == 1 and n >= 2 * 256:
        num_tiles = 2            # never leave one v7x TensorCore idle
    tn = _round_up(_cdiv(n, num_tiles), row_align)
    return tn, _cdiv(n, tn)


def _clamp_vmem(nbytes):
    return int(min(max(nbytes, _VMEM_FLOOR), _VMEM_CEIL))


def _ce_kernel(n_true, c_true, x_ref, tgt_ref, part_ref):
    """Per-tile partial of sum_i -log_softmax(x)[i, tgt_i] over valid rows."""
    i = pl.program_id(0)
    x = x_ref[...].astype(jnp.float32)                       # (TN, Cp)
    tgt = tgt_ref[...]                                       # (TN, 1) int32
    tn, c_phys = x.shape
    cls = jax.lax.broadcasted_iota(jnp.int32, (tn, c_phys), 1)
    if c_true != c_phys:                                     # static: only if C % 128
        x = jnp.where(cls < c_true, x, _NEG)                 # mask padded class lanes
    m = jnp.max(x, axis=1, keepdims=True)
    z = x - m
    lse = jnp.log(jnp.sum(jnp.exp(z), axis=1, keepdims=True))
    # Fused select+reduce of z at the target class (no full log-softmax tensor).
    z_t = jnp.sum(jnp.where(cls == tgt, z, 0.0), axis=1, keepdims=True)
    per_row = lse - z_t                                      # = -logp[i, tgt_i]
    row = jax.lax.broadcasted_iota(jnp.int32, (tn, 1), 0) + i * tn
    per_row = jnp.where(row < n_true, per_row, 0.0)          # ragged last tile
    part_ref[...] = jnp.full((1, 8, 128), jnp.sum(per_row), dtype=jnp.float32)


def _soft_kernel(n_true, c_true, x_ref, tgt_ref, t_ref, part_ref):
    """Per-tile partial of sum_i <T[tgt_i, :], clip(log_softmax(x_i))>."""
    i = pl.program_id(0)
    x = x_ref[...].astype(jnp.float32)                       # (TN, Cp)
    tgt = tgt_ref[...]                                       # (TN, 1) int32
    t_mat = t_ref[...]                                       # (Cp, Cp) f32, zero-padded
    tn, c_phys = x.shape
    cls = jax.lax.broadcasted_iota(jnp.int32, (tn, c_phys), 1)
    if c_true != c_phys:
        x = jnp.where(cls < c_true, x, _NEG)
    m = jnp.max(x, axis=1, keepdims=True)
    z = x - m
    lse = jnp.log(jnp.sum(jnp.exp(z), axis=1, keepdims=True))
    # Log-space clip: clip(logp, log eps, log(1-eps)) == log(clip(softmax, eps, 1-eps)).
    logp = jnp.clip(z - lse, _LOG_EPS, _LOG_1M_EPS)          # (TN, Cp)
    onehot = jnp.where(cls == tgt, 1.0, 0.0)                 # (TN, Cp), exact 0/1
    # Row-gather of T via 0/1 matmul, reordered as (onehot @ T): intermediate is
    # (TN, Cp) (not Cp^2), matches logp's layout, and M = TN fills the MXU.
    # onehot is exact in any precision and Mosaic's default f32 matmul keeps T
    # at full precision (verified on hardware at 1e-5 vs. the pure-JAX reference).
    t_rows = jnp.dot(onehot, t_mat, preferred_element_type=jnp.float32)
    per_row = jnp.sum(t_rows * logp, axis=1, keepdims=True)  # (TN, 1)
    row = jax.lax.broadcasted_iota(jnp.int32, (tn, 1), 0) + i * tn
    per_row = jnp.where(row < n_true, per_row, 0.0)          # ragged rows (NaN-safe)
    part_ref[...] = jnp.full((1, 8, 128), jnp.sum(per_row), dtype=jnp.float32)


def loss_function(outputs, targets, T=None):
    """JAX/Pallas port of nar/loss.py::LossFunction.forward (returns scalar f32)."""
    n, c = outputs.shape
    c_phys = _round_up(max(c, 128), 128)
    itemsize = jnp.dtype(outputs.dtype).itemsize            # bf16 accepted end-to-end
    row_align = 16 if itemsize <= 2 else 8                  # bf16 min tile is (16, 128)
    tn, num_tiles = _choose_tile_n(n, c_phys, itemsize, row_align)

    # No HBM-side padding of activations/targets: the x block is oversized to
    # (tn, c_phys) and the kernel masks invalid lanes/rows itself.
    tgt = targets.astype(jnp.int32).reshape(n, 1)

    x_spec = pl.BlockSpec((tn, c_phys), lambda i: (i, 0))
    tgt_spec = pl.BlockSpec((tn, 1), lambda i: (i, 0))
    out_shape = jax.ShapeDtypeStruct((num_tiles, 8, 128), jnp.float32)
    out_spec = pl.BlockSpec((1, 8, 128), lambda i: (i, 0, 0))   # lane-dense writeback

    # VMEM budget: double-buffered x + targets, plus in-kernel f32 temporaries.
    vmem_est = (2 * tn * c_phys * itemsize        # x, double-buffered
                + 2 * tn * 128 * 4                # (tn, 1) int32 targets, lane-padded
                + 6 * tn * c_phys * 4             # f32 temporaries headroom
                + (1 << 20))
    inv_n = jnp.float32(1.0 / n)                  # multiply, not divide, at finalize

    if T is None:
        cparams = pltpu.CompilerParams(
            dimension_semantics=("parallel",),    # batch tiles shard across TCs (v7x)
            vmem_limit_bytes=_clamp_vmem(vmem_est))
        partials = pl.pallas_call(
            functools.partial(_ce_kernel, n, c),
            out_shape=out_shape,
            grid=(num_tiles,),
            in_specs=[x_spec, tgt_spec],
            out_specs=out_spec,
            compiler_params=cparams,
        )(outputs, tgt)
        return jnp.sum(partials[:, 0, 0]) * inv_n

    # T is tiny relative to the activations: zero-pad it once to (c_phys, c_phys)
    # in fp32 (bf16 would lose ~3 decimal digits of the transition weights) so
    # the in-kernel matmul never touches uninitialised lanes.
    t_pad = T.astype(jnp.float32)
    if c_phys != c:
        t_pad = jnp.pad(t_pad, ((0, c_phys - c), (0, c_phys - c)))
    t_bytes = c_phys * c_phys * 4
    if t_bytes >= 2 * 1024 * 1024:
        # Grid-invariant block: single-buffer a large T so it doesn't burn 2x
        # VMEM (matters most under v7x's 64 MiB/TC ceiling).
        t_spec = pl.BlockSpec((c_phys, c_phys), lambda i: (0, 0),
                              pipeline_mode=pl.Buffered(1))
        t_bufs = 1
    else:
        t_spec = pl.BlockSpec((c_phys, c_phys), lambda i: (0, 0))
        t_bufs = 2
    # TODO(synk): for c_phys^2 * 4B beyond ~48 MiB, T itself no longer fits v7x
    # VMEM and would need a second, class-tiled grid axis.
    cparams = pltpu.CompilerParams(
        dimension_semantics=("parallel",),
        vmem_limit_bytes=_clamp_vmem(vmem_est + t_bufs * t_bytes))
    partials = pl.pallas_call(
        functools.partial(_soft_kernel, n, c),
        out_shape=out_shape,
        grid=(num_tiles,),
        in_specs=[x_spec, tgt_spec, t_spec],
        out_specs=out_spec,
        compiler_params=cparams,
    )(outputs, tgt, t_pad)
    return -jnp.sum(partials[:, 0, 0]) * inv_n


def _ref_loss(outputs, targets, T=None):
    """Pure-JAX reference mirroring the PyTorch module."""
    x = outputs.astype(jnp.float32)
    if T is None:
        logp = jax.nn.log_softmax(x, axis=1)
        picked = jnp.take_along_axis(logp, targets[:, None].astype(jnp.int32), axis=1)
        return -jnp.mean(picked)
    p = jnp.clip(jax.nn.softmax(x, axis=1), EPS, 1.0 - EPS)
    tp = T.astype(jnp.float32)[targets]           # rows of T (== onehot @ T), exact
    return -jnp.mean(jnp.sum(tp * jnp.log(p), axis=1))


if __name__ == "__main__":
    key = jax.random.PRNGKey(0)
    k1, k2, k3 = jax.random.split(key, 3)

    # Small shapes: batch=8, num_classes=32.
    N, C = 8, 32
    outputs = jax.random.normal(k1, (N, C), dtype=jnp.float32)
    targets = jax.random.randint(k2, (N,), 0, C, dtype=jnp.int32)
    raw = jax.random.uniform(k3, (C, C), dtype=jnp.float32) + 0.1
    T = raw / jnp.sum(raw, axis=1, keepdims=True)   # rows sum to 1

    # Branch 1: T is None -> standard cross entropy.
    loss_ce = loss_function(outputs, targets, T=None)
    jax.block_until_ready(loss_ce)
    ref_ce = _ref_loss(outputs, targets, None)
    assert jnp.allclose(loss_ce, ref_ce, atol=1e-5), (loss_ce, ref_ce)

    # Branch 2: T given -> noise-transition weighted loss.
    loss_t = loss_function(outputs, targets, T=T)
    jax.block_until_ready(loss_t)
    ref_t = _ref_loss(outputs, targets, T)
    assert jnp.allclose(loss_t, ref_t, atol=1e-5), (loss_t, ref_t)

    # Larger, non-aligned shapes: exercises lane masking (C % 128 != 0) and
    # batch-remainder row masking without any HBM-side padding.
    k4, k5, k6 = jax.random.split(jax.random.PRNGKey(1), 3)
    N2, C2 = 300, 200
    outputs2 = jax.random.normal(k4, (N2, C2), dtype=jnp.float32)
    targets2 = jax.random.randint(k5, (N2,), 0, C2, dtype=jnp.int32)
    raw2 = jax.random.uniform(k6, (C2, C2), dtype=jnp.float32) + 0.1
    T2 = raw2 / jnp.sum(raw2, axis=1, keepdims=True)

    loss_ce2 = loss_function(outputs2, targets2, T=None)
    jax.block_until_ready(loss_ce2)
    assert jnp.allclose(loss_ce2, _ref_loss(outputs2, targets2, None), atol=1e-5)

    loss_t2 = loss_function(outputs2, targets2, T=T2)
    jax.block_until_ready(loss_t2)
    assert jnp.allclose(loss_t2, _ref_loss(outputs2, targets2, T2), atol=1e-5)

    print("KERNEL_OK")
</pallas_src>

<mosaic_0001>
module attributes {stable_mosaic.version = 11 : i64} {
  func.func @_ce_kernel(%arg0: i32, %arg1: memref<8x128xf32, #tpu.memory_space<vmem>>, %arg2: memref<8x1xi32, #tpu.memory_space<vmem>>, %arg3: memref<1x8x128xf32, #tpu.memory_space<vmem>>) attributes {dimension_semantics = [#tpu.dimension_semantics<parallel>], iteration_bounds = array<i64: 1>, scalar_prefetch = 0 : i64, scratch_operands = 0 : i64, tpu.core_type = #tpu.core_type<tc>, window_params = [{transform_indices = @transform_0, window_bounds = array<i64: 8, 128>}, {transform_indices = @transform_1, window_bounds = array<i64: 8, 1>}, {transform_indices = @transform_2, window_bounds = array<i64: 1, 8, 128>}]} {
    %c0 = arith.constant 0 : index
    %c0_0 = arith.constant 0 : index
    %0 = vector.load %arg1[%c0, %c0_0] : memref<8x128xf32, #tpu.memory_space<vmem>>, vector<8x128xf32>
    %c0_1 = arith.constant 0 : index
    %c0_2 = arith.constant 0 : index
    %1 = vector.load %arg2[%c0_1, %c0_2] : memref<8x1xi32, #tpu.memory_space<vmem>>, vector<8x1xi32>
    %2 = tpu.iota {dimensions = array<i32: 1>} : vector<8x128xi32>
    %c32_i32 = arith.constant 32 : i32
    %3 = vector.broadcast %c32_i32 : i32 to vector<8x128xi32>
    %4 = arith.cmpi slt, %2, %3 : vector<8x128xi32>
    %cst = arith.constant -1.000000e+09 : f32
    %5 = vector.broadcast %cst : f32 to vector<8x128xf32>
    %6 = arith.select %4, %0, %5 : vector<8x128xi1>, vector<8x128xf32>
    %cst_3 = arith.constant dense<0xFF800000> : vector<8xf32>
    %7 = vector.multi_reduction <maximumf>, %6, %cst_3 [1] : vector<8x128xf32> to vector<8xf32>
    %8 = vector.shape_cast %7 : vector<8xf32> to vector<8x1xf32>
    %9 = vector.broadcast %8 : vector<8x1xf32> to vector<8x128xf32>
    %10 = arith.subf %6, %9 : vector<8x128xf32>
    %11 = math.exp %10 : vector<8x128xf32>
    %cst_4 = arith.constant dense<0.000000e+00> : vector<8xf32>
    %12 = vector.multi_reduction <add>, %11, %cst_4 [1] : vector<8x128xf32> to vector<8xf32>
    %13 = vector.shape_cast %12 : vector<8xf32> to vector<8x1xf32>
    %14 = math.log %13 : vector<8x1xf32>
    %15 = vector.broadcast %1 : vector<8x1xi32> to vector<8x128xi32>
    %16 = arith.cmpi eq, %2, %15 : vector<8x128xi32>
    %cst_5 = arith.constant 0.000000e+00 : f32
    %17 = vector.broadcast %cst_5 : f32 to vector<8x128xf32>
    %18 = arith.select %16, %10, %17 : vector<8x128xi1>, vector<8x128xf32>
    %cst_6 = arith.constant dense<0.000000e+00> : vector<8xf32>
    %19 = vector.multi_reduction <add>, %18, %cst_6 [1] : vector<8x128xf32> to vector<8xf32>
    %20 = vector.shape_cast %19 : vector<8xf32> to vector<8x1xf32>
    %21 = arith.subf %14, %20 : vector<8x1xf32>
    %22 = tpu.iota {dimensions = array<i32: 0>} : vector<8x1xi32>
    %c8_i32 = arith.constant 8 : i32
    %23 = arith.muli %arg0, %c8_i32 : i32
    %24 = vector.broadcast %23 : i32 to vector<8x1xi32>
    %25 = arith.addi %22, %24 : vector<8x1xi32>
    %c8_i32_7 = arith.constant 8 : i32
    %26 = vector.broadcast %c8_i32_7 : i32 to vector<8x1xi32>
    %27 = arith.cmpi slt, %25, %26 : vector<8x1xi32>
    %cst_8 = arith.constant 0.000000e+00 : f32
    %28 = vector.broadcast %cst_8 : f32 to vector<8x1xf32>
    %29 = arith.select %27, %21, %28 : vector<8x1xi1>, vector<8x1xf32>
    %30 = vector.shape_cast %29 : vector<8x1xf32> to vector<1x8x1xf32>
    %cst_9 = arith.constant dense<0.000000e+00> : vector<1xf32>
    %31 = vector.multi_reduction <add>, %30, %cst_9 [1, 2] : vector<1x8x1xf32> to vector<1xf32>
    %32 = vector.shape_cast %31 : vector<1xf32> to vector<1x1x1xf32>
    %33 = vector.extract %32[0, 0, 0] : f32 from vector<1x1x1xf32>
    %34 = vector.broadcast %33 : f32 to vector<1x8x128xf32>
    %c0_10 = arith.constant 0 : index
    %c0_11 = arith.constant 0 : index
    %c0_12 = arith.constant 0 : index
    %35 = vector.load %arg3[%c0_10, %c0_11, %c0_12] : memref<1x8x128xf32, #tpu.memory_space<vmem>>, vector<1x8x128xf32>
    tpu.vector_store %arg3[%c0_10, %c0_11, %c0_12], %34 {strides = array<i32>} : memref<1x8x128xf32, #tpu.memory_space<vmem>>, vector<1x8x128xf32>,
    return
  }
  func.func @transform_0(%arg0: i32) -> (i32, i32) {
    %c0_i32 = arith.constant 0 : i32
    %c0_i32_0 = arith.constant 0 : i32
    return %arg0, %c0_i32 : i32, i32
  }
  func.func @transform_1(%arg0: i32) -> (i32, i32) {
    %c0_i32 = arith.constant 0 : i32
    %c0_i32_0 = arith.constant 0 : i32
    return %arg0, %c0_i32 : i32, i32
  }
  func.func @transform_2(%arg0: i32) -> (i32, i32, i32) {
    %c0_i32 = arith.constant 0 : i32
    %c0_i32_0 = arith.constant 0 : i32
    %c0_i32_1 = arith.constant 0 : i32
    return %arg0, %c0_i32, %c0_i32_0 : i32, i32, i32
  }
}

</mosaic_0001>

<bundles_post_ra>
// kernel: tpu_custom_call.1
= control target key start
LH: loop header
LB: loop body
LE: loop exit
PB: predicated region body
PF: predicated region fallthrough
CT: control target
= control target key end

     0   :  { %v14_v0 = vlaneseq  ;;  %s137_s0 = inlined_call_operand.vmem [shape: f32[8,32], index: 0, kind: input, shape index: {}]   ;;  %s138_s1 = inlined_call_operand.vmem [shape: s32[8,1], index: 1, kind: input, shape index: {}]   ;;  %s139_s2 = inlined_call_operand.hbm [shape: f32[1,8,128], index: 2, kind: output, shape index: {}]  }
   0x1   :  { %7 = vsyncpa [#allocation3], 0  ;;  %v102_v1 = vmov 0   ;;  %v12_v2 = vld [vmem:[%s137_s0] sm:$0xff]  ;;  %vm42_vm2 = vcmask 7168   ;;  %s103_s0 = smov [#allocation2]  }
   0x2   :  { %73 = vset.pattern.permute.xlu0 %v102_v1  ;;  %v15_v3 = vand.u32 127, %v14_v0  ;;  %v13_v5 = vld [vmem:[%s138_s1] sm:$0xff]  ;;  %s61_s1 = sshll.u32 %s103_s0, 4  ;;  %s62_s1 = int_to_ptr.vmem [resolvable:$true] %s61_s1 }
   0x3   :  { %s78_s14 = scalar_lea.vmem %s62_s1, 128  ;;  %p83_p1 = scmp.lt.s32.totalorder %s62_s1, %s62_s1 }
   0x4   :  { %vm16_vm0 = vcmp.lt.s32.totalorder %v15_v3, 32  ;;  %p79_p0 = scmp.ne.s32.totalorder %s62_s1, %s78_s14  ;;  %p84_p2 = scmp.lt.s32.totalorder %s78_s14, %s78_s14 }
   0x5   :  { %v17_v4 = vsel %vm16_vm0, %v12_v2, -1e+09 }
   0x6   :  { %18 = vmax.xlane.f32.xlu0 %v17_v4  ;;  %p85_p3 = por %p84_p2, %p83_p1 }
   0x8   :  { %p86_p4 = pnand %p85_p3, %p79_p0 }
  0x1c   :  { %28 = vperm.xlu0 %73, %v13_v5  }
  0x93   :  { %v19_v6 = vpop.xlane.xlu0 %18 }
  0x94   :  { %v20_v7 = vsub.f32 %v17_v4, %v19_v6 }
  0x96   :  { %v21_v8 = vmul.f32 1.442695, %v20_v7 }
  0x98   :  { %74 = vpow2.f32 %v21_v8 }
  0x9b   :  { %v29_v9 = vpop.permute.xlu0 %28 }
  0x9c   :  { %vm30_vm1 = vcmp.eq.s32.totalorder %v15_v3, %v29_v9 }
  0x9d   :  { %v31_v11 = vsel %vm30_vm1, %v20_v7, 0.0 }
  0xa2   :  { %v75_v10 = vpop.eup %74 }
  0xa3   :  { %23 = vadd.xlane.f32.xlu1 %v75_v10 }
  0xa7   :  { %32 = vadd.xlane.f32.xlu1 %v31_v11 }
 0x130   :  { %v24_v12 = vpop.xlane.xlu1 %23 }
 0x131   :  { %76 = vlog2.f32 %v24_v12 }
 0x134   :  { %v33_v15 = vpop.xlane.xlu1 %32 }
 0x13b   :  { %v77_v13 = vpop.eup %76 }
 0x13c   :  { %v26_v14 = vmul.f32 0.6931472, %v77_v13 }
 0x13e   :  { %v34_v16 = vsub.f32 %v26_v14, %v33_v15 }
 0x140   :  { %v43_v17 = vsel %vm42_vm2, %v34_v16, 0.0 }
 0x141   :  { %44 = vadd.xlane.f32.xlu1 %v43_v17 }
 0x1ce   :  { %v45_v18 = vpop.xlane.xlu1 %44 }
 0x1cf   :  { %v46_v19 = vrot.slane %v45_v18, 4 }
 0x1d1   :  { %v47_v20 = vadd.f32 %v46_v19, %v45_v18 }
 0x1d3   :  { %v48_v21 = vrot.slane %v47_v20, 2 }
 0x1d5   :  { %v49_v22 = vadd.f32 %v48_v21, %v47_v20 }
 0x1d7   :  { %v50_v23 = vrot.slane %v49_v22, 1 }
 0x1d9   :  { %v51_v24 = vadd.f32 %v50_v23, %v49_v22 }
 0x1db   :  { %69 = vpush %v51_v24 }
 0x20c   :  { %s70_s13 = spop %69 }
 0x20d   :  { %v53_v25 = vstv %s70_s13 }
 0x20e   :  { %54 = vst [vmem:[#allocation2] sm:$0xff] %v53_v25 }
 0x20f   :  { %89 = shalt.err (!%p86_p4)
}
 0x210   :  { %s90_s17 = scalar_lea.hbm %s139_s2, 128 }
 0x211   :  { %p91_p5 = scmp.ne.s32.totalorder %s139_s2, %s90_s17  ;;  %p94_p6 = scmp.lt.u32.totalorder %s90_s17, %s139_s2 }
 0x213   :  { %p96_p7 = pnand %p94_p6, %p91_p5 }
 0x215   :  { %99 = shalt.err (!%p96_p7)
}
 0x216   :  { %64 = dma.vmem_to_hbm [thread:$0]  %s62_s1, 128, %s139_s2, [#allocation3]  }
 0x217   :  { %100 = dma.done.wait [#allocation3], 128  }
 0x218   :  { %101 = vsyncadd [#allocation3], 4294967168 }
 0x219   :  { %68 = vsyncpa [#allocation3], 1 }

</bundles_post_ra>
